<compile_context>
chip_gen: v7x
topology: tpu7x:2x2x1
jax: 0.10.0
libtpu: 0.0.40
codegen_flags: <defaults>
</compile_context>

<pallas_src>
import jax
import jax.numpy as jnp
from jax.experimental import pallas as pl
from jax.experimental.pallas import tpu as pltpu


# ---------------------------------------------------------------------------
# Path 1: the faithful forward pass — pure identity, no kernel launch.
# ---------------------------------------------------------------------------
def distribution_r_forward(x: jax.Array) -> jax.Array:
    """DistributionR.forward — returns input unchanged (optimal: no kernel).

    # TODO(synk): the side-effectful `self.R = input` attribute caching has no
    # Pallas analog; functionally the forward pass is `return input`.
    """
    return x


# ---------------------------------------------------------------------------
# Path 3: direct HBM->HBM chunked DMA copy (no VMEM round trip, no grid).
# ---------------------------------------------------------------------------
def _make_dma_copy_kernel(chunks):
    """Kernel issuing one HBM->HBM DMA per static (start, size) chunk."""

    def kernel(x_hbm, o_hbm, sems):
        copies = []
        for idx, (start, size) in enumerate(chunks):
            cp = pltpu.make_async_copy(
                x_hbm.at[pl.ds(start, size)],
                o_hbm.at[pl.ds(start, size)],
                sems.at[idx],
            )
            cp.start()
            copies.append(cp)
        for cp in copies:
            cp.wait()

    return kernel


def distribution_r_forward_dma(x: jax.Array) -> jax.Array:
    """Materialize a copy of `x` with chunked HBM->HBM DMAs (pl.ANY refs).

    The DMA engines alone saturate HBM for a pure copy: no grid-step overhead,
    no vld/vst body, zero VMEM pressure (only DMA semaphores as scratch), and
    it works for any shape / element count without padding.
    """
    if x.size == 0 or x.ndim == 0:
        return x

    d0 = x.shape[0]
    n_chunks = min(4, d0)  # a few parallel DMAs along the leading axis
    base, rem = divmod(d0, n_chunks)
    chunks, start = [], 0
    for c in range(n_chunks):
        size = base + (1 if c < rem else 0)
        chunks.append((start, size))
        start += size

    nbytes = x.size * jnp.dtype(x.dtype).itemsize
    return pl.pallas_call(
        _make_dma_copy_kernel(tuple(chunks)),
        out_shape=jax.ShapeDtypeStruct(x.shape, x.dtype),
        in_specs=[pl.BlockSpec(memory_space=pl.ANY)],
        out_specs=pl.BlockSpec(memory_space=pl.ANY),
        scratch_shapes=[pltpu.SemaphoreType.DMA((n_chunks,))],
        cost_estimate=pl.CostEstimate(
            flops=0, transcendentals=0, bytes_accessed=2 * nbytes
        ),
    )(x)


# ---------------------------------------------------------------------------
# Path 2: lane-dense, pipelined VMEM copy (BlockSpec auto-pipelining).
# ---------------------------------------------------------------------------
def _copy_kernel(x_ref, o_ref):
    # Pure tile copy: vld/vst only, fully hidden under the HBM<->VMEM DMAs.
    o_ref[...] = x_ref[...]


def distribution_r_forward_materialized(x: jax.Array) -> jax.Array:
    """Explicitly materialize a copy of `x` with a Pallas TPU copy kernel."""
    orig_shape = x.shape
    dtype = x.dtype
    n = x.size
    if n == 0:
        return x

    itemsize = jnp.dtype(dtype).itemsize
    # Sublane packing multiple per dtype: 8 (32-bit), 16 (bf16), 32 (int8/fp8).
    # TODO(synk): sub-byte dtypes (e.g. int4) report itemsize 1 and would need
    # a larger packing multiple.
    sublane_mult = max(8, 32 // max(itemsize, 1))

    # Largest lane width in {512, 256, 128} that divides n exactly: no wrapper
    # pad and no trailing [:n] slice (each of those is a full extra HBM pass).
    lanes = next((c for c in (512, 256, 128) if n % c == 0), None)
    if lanes is None:
        # Element count not a multiple of 128: use the HBM->HBM DMA copy,
        # which has no lane-layout constraint and needs no padding.
        return distribution_r_forward_dma(x)

    rows = n // lanes
    x2 = x.reshape(rows, lanes)

    # ~4 MiB per tile (rounded to the sublane packing multiple).  With the
    # default 2-deep double buffering this is 2 x (in + out) x 4 MiB = 16 MiB
    # of VMEM; raising the scoped limit to 32 MiB keeps it safe on v5e
    # (16 MiB scoped default) while staying under v7x's 64 MiB physical VMEM.
    target_rows = max(sublane_mult, (4 << 20) // (lanes * itemsize))
    target_rows = (target_rows // sublane_mult) * sublane_mult
    tile_rows = min(rows, target_rows)
    grid = (pl.cdiv(rows, tile_rows),)

    out2 = pl.pallas_call(
        _copy_kernel,
        out_shape=jax.ShapeDtypeStruct((rows, lanes), dtype),
        grid_spec=pltpu.PrefetchScalarGridSpec(
            num_scalar_prefetch=0,
            grid=grid,
            # Each block spans the full row width -> one contiguous HBM span
            # per block DMA (never sub-tile the lane dimension).
            in_specs=[pl.BlockSpec((tile_rows, lanes), lambda i: (i, 0))],
            out_specs=pl.BlockSpec((tile_rows, lanes), lambda i: (i, 0)),
        ),
        compiler_params=pltpu.CompilerParams(
            # TODO(synk): on v7x verify "parallel" actually shards the row
            # range across both TensorCores (else use CORE_PARALLEL/core_map).
            dimension_semantics=("parallel",),
            vmem_limit_bytes=32 << 20,
        ),
        cost_estimate=pl.CostEstimate(
            flops=0, transcendentals=0, bytes_accessed=2 * n * itemsize
        ),
    )(x2)

    return out2.reshape(orig_shape)


if __name__ == "__main__":
    key = jax.random.PRNGKey(0)
    # Small NCHW input consistent with the module's conv-style usage context.
    x = jax.random.normal(key, (2, 4, 16, 16), dtype=jnp.float32)

    # Optimal path: pure identity, no kernel launch.
    y_fast = distribution_r_forward(x)
    assert y_fast is x  # holds outside jit; under jit XLA aliases the buffer

    # Lane-dense pipelined copy kernel (n = 2048 -> (4, 512) slab).
    y = distribution_r_forward_materialized(x)
    jax.block_until_ready(y)
    assert y.shape == x.shape and y.dtype == x.dtype
    assert bool(jnp.array_equal(y, x)), "pipelined copy kernel mismatch"

    # Direct HBM->HBM DMA copy variant.
    y_dma = distribution_r_forward_dma(x)
    jax.block_until_ready(y_dma)
    assert bool(jnp.array_equal(y_dma, x)), "DMA copy kernel mismatch"

    # Element count not divisible by 128 (3*5*7 = 105): exercises the padless
    # fallback (routed to the DMA copy — no whole-tensor pad/slice passes).
    x_odd = jax.random.normal(jax.random.PRNGKey(1), (3, 5, 7), dtype=jnp.float32)
    y_odd = distribution_r_forward_materialized(x_odd)
    jax.block_until_ready(y_odd)
    assert bool(jnp.array_equal(y_odd, x_odd)), "odd-size copy mismatch"

    print("KERNEL_OK")
</pallas_src>

<mosaic_0001>
module attributes {stable_mosaic.version = 11 : i64} {
  func.func @_copy_kernel(%arg0: i32, %arg1: memref<4x512xf32, #tpu.memory_space<vmem>>, %arg2: memref<4x512xf32, #tpu.memory_space<vmem>>) attributes {dimension_semantics = [#tpu.dimension_semantics<parallel>], iteration_bounds = array<i64: 1>, scalar_prefetch = 0 : i64, scratch_operands = 0 : i64, tpu.core_type = #tpu.core_type<tc>, window_params = [{transform_indices = @transform_0, window_bounds = array<i64: 4, 512>}, {transform_indices = @transform_1, window_bounds = array<i64: 4, 512>}]} {
    %c0 = arith.constant 0 : index
    %c0_0 = arith.constant 0 : index
    %0 = vector.load %arg1[%c0, %c0_0] : memref<4x512xf32, #tpu.memory_space<vmem>>, vector<4x512xf32>
    %c0_1 = arith.constant 0 : index
    %c0_2 = arith.constant 0 : index
    %1 = vector.load %arg2[%c0_1, %c0_2] : memref<4x512xf32, #tpu.memory_space<vmem>>, vector<4x512xf32>
    tpu.vector_store %arg2[%c0_1, %c0_2], %0 {strides = array<i32>} : memref<4x512xf32, #tpu.memory_space<vmem>>, vector<4x512xf32>,
    return
  }
  func.func @transform_0(%arg0: i32) -> (i32, i32) {
    %c0_i32 = arith.constant 0 : i32
    %c0_i32_0 = arith.constant 0 : i32
    return %arg0, %c0_i32 : i32, i32
  }
  func.func @transform_1(%arg0: i32) -> (i32, i32) {
    %c0_i32 = arith.constant 0 : i32
    %c0_i32_0 = arith.constant 0 : i32
    return %arg0, %c0_i32 : i32, i32
  }
}

</mosaic_0001>

<bundles_post_ra>
// kernel: tpu_custom_call.1
= control target key start
LH: loop header
LB: loop body
LE: loop exit
PB: predicated region body
PF: predicated region fallthrough
CT: control target
= control target key end

     0   :  { %6 = vsyncpa [#allocation3], 0  ;;  %s126_s0 = inlined_call_operand.hbm [shape: f32[4,512], index: 0, kind: input, shape index: {}]   ;;  %s127_s1 = inlined_call_operand.hbm [shape: f32[4,512], index: 1, kind: output, shape index: {}]  }
   0x1   :  { %7 = vsyncpa [#allocation4], 0  ;;  %s90_s6 = smov [#allocation2]   ;;  %s42_s10 = scalar_lea.hbm %s126_s0, 256 }
   0x2   :  { %s14_s7 = sshll.u32 %s90_s6, 4  ;;  %p43_p0 = scmp.ne.s32.totalorder %s126_s0, %s42_s10  ;;  %s15_s7 = int_to_ptr.vmem [resolvable:$true] %s14_s7 }
   0x3   :  { %p46_p1 = scmp.lt.u32.totalorder %s42_s10, %s126_s0 }
   0x5   :  { %p48_p2 = pnand %p46_p1, %p43_p0 }
   0x7   :  { %51 = shalt.err (!%p48_p2)
}
   0x8   :  { %s52_s15 = scalar_lea.vmem %s15_s7, 256  ;;  %p57_p4 = scmp.lt.s32.totalorder %s15_s7, %s15_s7 }
   0x9   :  { %p53_p3 = scmp.ne.s32.totalorder %s15_s7, %s52_s15  ;;  %p58_p5 = scmp.lt.s32.totalorder %s52_s15, %s52_s15 }
   0xb   :  { %p59_p6 = por %p58_p5, %p57_p4 }
   0xd   :  { %p60_p7 = pnand %p59_p6, %p53_p3 }
   0xf   :  { %63 = shalt.err (!%p60_p7)
}
  0x10   :  { %17 = dma.hbm_to_vmem [thread:$0]  %s126_s0, 256, %s15_s7, [#allocation3]  }
  0x11   :  { %86 = dma.done.wait [#allocation3], 256  }
  0x12   :  { %87 = vsyncadd [#allocation3], 4294967040  ;;  %s91_s18 = smov [#allocation5]   ;;  %v21_v0 = vld [vmem:[#allocation2] sm:$0xff]  ;;  %v22_v1 = vld [vmem:[#allocation2 + $0x8] sm:$0xff] }
  0x13   :  { %s31_s19 = sshll.u32 %s91_s18, 4  ;;  %23 = vst [vmem:[#allocation5] sm:$0xff] %v21_v0  ;;  %24 = vst [vmem:[#allocation5 + $0x8] sm:$0xff] %v22_v1  ;;  %s32_s19 = int_to_ptr.vmem [resolvable:$true] %s31_s19 }
  0x14   :  { %s64_s20 = scalar_lea.vmem %s32_s19, 256  ;;  %p69_p9 = scmp.lt.s32.totalorder %s32_s19, %s32_s19 }
  0x15   :  { %p65_p8 = scmp.ne.s32.totalorder %s32_s19, %s64_s20  ;;  %p70_p10 = scmp.lt.s32.totalorder %s64_s20, %s64_s20 }
  0x17   :  { %p71_p11 = por %p70_p10, %p69_p9 }
  0x19   :  { %p72_p12 = pnand %p71_p11, %p65_p8 }
  0x1b   :  { %75 = shalt.err (!%p72_p12)
}
  0x1c   :  { %s76_s0 = scalar_lea.hbm %s127_s1, 256 }
  0x1d   :  { %p77_p13 = scmp.ne.s32.totalorder %s127_s1, %s76_s0  ;;  %p80_p0 = scmp.lt.u32.totalorder %s76_s0, %s127_s1 }
  0x1f   :  { %p82_p1 = pnand %p80_p0, %p77_p13 }
  0x21   :  { %85 = shalt.err (!%p82_p1)
}
  0x22   :  { %34 = dma.vmem_to_hbm [thread:$0]  %s32_s19, 256, %s127_s1, [#allocation4]  }
  0x23   :  { %88 = dma.done.wait [#allocation4], 256  }
  0x24   :  { %89 = vsyncadd [#allocation4], 4294967040 }
  0x25   :  { %38 = vsyncpa [#allocation3], 1 }
  0x26   :  { %39 = vsyncpa [#allocation4], 1 }

</bundles_post_ra>
